<compile_context>
chip_gen: v7x
topology: tpu7x:2x2x1
jax: 0.10.0
libtpu: 0.0.40
codegen_flags: <defaults>
</compile_context>

<pallas_src>
import functools

import jax
import jax.numpy as jnp
from jax.experimental import pallas as pl
from jax.experimental.pallas import tpu as pltpu


def _round_up(x, m):
    return ((x + m - 1) // m) * m


def _ce_label_smooth_kernel(logits_ref, targets_ref, partial_ref,
                            m_sc, l_sc, sumx_sc, xt_sc, *,
                            epsilon, batch_size, num_classes,
                            block_rows, block_cols,
                            padded_classes, padded_batch):
    # logits_ref: (TB, TK) float block; targets_ref: (TB, 1) int32 block.
    # partial_ref: (num_row_tiles, 1) f32 in SMEM, resident across the whole grid.
    # m_sc/l_sc/sumx_sc/xt_sc: (TB, 1) f32 VMEM scratch (online logsumexp state).
    i = pl.program_id(0)
    j = pl.program_id(1)
    nj = pl.num_programs(1)

    @pl.when(j == 0)
    def _():
        m_sc[...] = jnp.full_like(m_sc, -1e30)
        l_sc[...] = jnp.zeros_like(l_sc)
        sumx_sc[...] = jnp.zeros_like(sumx_sc)
        xt_sc[...] = jnp.zeros_like(xt_sc)

    x = logits_ref[...].astype(jnp.float32)                     # (TB, TK)
    tb, tk = x.shape

    # Global class ids of this tile's lanes.
    cls = j * block_cols + jax.lax.broadcasted_iota(jnp.int32, (tb, tk), 1)

    if padded_classes:
        valid = cls < num_classes
        x_max_in = jnp.where(valid, x, -1e30)   # padded cols never win max / exp->0
        x_sum_in = jnp.where(valid, x, 0.0)     # padded cols excluded from sum(x)
    else:
        x_max_in = x
        x_sum_in = x

    # Online logsumexp update.
    tile_max = jnp.max(x_max_in, axis=1, keepdims=True)         # (TB, 1)
    m_prev = m_sc[...]
    m_new = jnp.maximum(m_prev, tile_max)
    e = jnp.exp(x_max_in - m_new)                                # (TB, TK)
    l_sc[...] = l_sc[...] * jnp.exp(m_prev - m_new) + jnp.sum(e, axis=1, keepdims=True)
    m_sc[...] = m_new

    # Running raw-logit sum over true classes.
    sumx_sc[...] = sumx_sc[...] + jnp.sum(x_sum_in, axis=1, keepdims=True)

    # Target logit pick via iota-compare (at most one class tile contributes).
    t = targets_ref[...]                                         # (TB, 1) int32
    xt_sc[...] = xt_sc[...] + jnp.sum(jnp.where(cls == t, x, 0.0),
                                      axis=1, keepdims=True)

    @pl.when(j == nj - 1)
    def _():
        lse = m_sc[...] + jnp.log(l_sc[...])                     # (TB, 1)
        k_f = jnp.float32(num_classes)
        # per-row loss = -(1-eps)*logp[target] - (eps/K)*sum(logp)
        #             = (1-eps)*(lse - x_t) + (eps/K)*(K*lse - sum(x))
        row_loss = ((1.0 - epsilon) * (lse - xt_sc[...])
                    + (epsilon / num_classes) * (k_f * lse - sumx_sc[...]))
        if padded_batch:
            row_ids = i * block_rows + jax.lax.broadcasted_iota(jnp.int32, (tb, 1), 0)
            row_loss = jnp.where(row_ids < batch_size, row_loss, 0.0)
        partial_ref[i, 0] = jnp.sum(row_loss)


def cross_entropy_label_smooth(logits, targets, *, num_classes, epsilon=0.1,
                               block_rows=512, max_block_cols=2048):
    """JAX/Pallas equivalent of CrossEntropyLabelSmooth.forward.

    Args:
      logits:  (batch, num_classes) prediction matrix (pre-softmax).
      targets: (batch,) integer class labels.
    Returns:
      scalar float32 loss.
    """
    B, K = logits.shape
    assert K == num_classes

    # --- class (lane) tiling ---
    if K <= max_block_cols:
        tk = K                       # single class tile; full-dim block (no 128 rule)
        K_pad = K
    else:
        tk = max_block_cols
        assert tk % 128 == 0, "max_block_cols must be a multiple of 128"
        K_pad = _round_up(K, tk)

    # --- batch (sublane) tiling, sized so 2x double-buffered logits blocks stay well
    # inside the default scoped VMEM limit on every TPU generation (~24 MiB budget). ---
    bytes_per_row = tk * jnp.dtype(logits.dtype).itemsize
    tb_cap = max(8, (24 * 1024 * 1024) // (2 * bytes_per_row))
    tb = min(block_rows, tb_cap, _round_up(B, 8))
    tb = max(8, (tb // 8) * 8)                     # sublane-aligned tile rows

    B_pad = _round_up(B, tb)
    num_row_tiles = B_pad // tb
    num_col_tiles = K_pad // tk

    if B_pad != B or K_pad != K:
        logits = jnp.pad(logits, ((0, B_pad - B), (0, K_pad - K)))
    if B_pad != B:
        targets = jnp.pad(targets, (0, B_pad - B))
    targets_2d = targets.reshape(B_pad, 1).astype(jnp.int32)

    kernel = functools.partial(
        _ce_label_smooth_kernel,
        epsilon=float(epsilon),
        batch_size=B,
        num_classes=K,
        block_rows=tb,
        block_cols=tk,
        padded_classes=(K_pad != K),
        padded_batch=(B_pad != B),
    )

    partials = pl.pallas_call(
        kernel,
        out_shape=jax.ShapeDtypeStruct((num_row_tiles, 1), jnp.float32),
        grid=(num_row_tiles, num_col_tiles),
        in_specs=[
            pl.BlockSpec((tb, tk), lambda i, j: (i, j)),   # logits tile (pipelined DMA)
            pl.BlockSpec((tb, 1), lambda i, j: (i, 0)),    # labels column tile
        ],
        # Per-row-tile scalar partials; whole array lives in SMEM across grid steps.
        out_specs=pl.BlockSpec(memory_space=pltpu.SMEM),
        scratch_shapes=[pltpu.VMEM((tb, 1), jnp.float32)] * 4,
        compiler_params=pltpu.CompilerParams(
            dimension_semantics=("arbitrary", "arbitrary")),
    )(logits, targets_2d)

    return jnp.sum(partials) / B


def _reference(logits, targets, epsilon, num_classes):
    lp = jax.nn.log_softmax(logits.astype(jnp.float32), axis=1)
    onehot = jax.nn.one_hot(targets, num_classes, dtype=jnp.float32)
    smooth = (1.0 - epsilon) * onehot + epsilon / num_classes
    return jnp.sum(jnp.mean(-smooth * lp, axis=0))


if __name__ == "__main__":
    epsilon = 0.1
    key = jax.random.PRNGKey(0)
    ks = jax.random.split(key, 8)

    # Case 1: small, tile-aligned shapes (single block).
    nc1, b1 = 16, 8
    logits1 = jax.random.normal(ks[0], (b1, nc1), dtype=jnp.float32)
    targets1 = jax.random.randint(ks[1], (b1,), 0, nc1, dtype=jnp.int32)
    loss1 = cross_entropy_label_smooth(logits1, targets1, num_classes=nc1, epsilon=epsilon)
    jax.block_until_ready(loss1)
    ref1 = _reference(logits1, targets1, epsilon, nc1)
    assert jnp.allclose(loss1, ref1, atol=1e-4, rtol=1e-4), (loss1, ref1)

    # Case 2: ragged batch (exercises padded-row masking).
    nc2, b2 = 24, 10
    logits2 = jax.random.normal(ks[2], (b2, nc2), dtype=jnp.float32)
    targets2 = jax.random.randint(ks[3], (b2,), 0, nc2, dtype=jnp.int32)
    loss2 = cross_entropy_label_smooth(logits2, targets2, num_classes=nc2, epsilon=epsilon)
    jax.block_until_ready(loss2)
    ref2 = _reference(logits2, targets2, epsilon, nc2)
    assert jnp.allclose(loss2, ref2, atol=1e-4, rtol=1e-4), (loss2, ref2)

    # Case 3: class-tiled path (online logsumexp across 3 class tiles).
    nc3, b3 = 384, 16
    logits3 = jax.random.normal(ks[4], (b3, nc3), dtype=jnp.float32)
    targets3 = jax.random.randint(ks[5], (b3,), 0, nc3, dtype=jnp.int32)
    loss3 = cross_entropy_label_smooth(logits3, targets3, num_classes=nc3,
                                       epsilon=epsilon, max_block_cols=128)
    jax.block_until_ready(loss3)
    ref3 = _reference(logits3, targets3, epsilon, nc3)
    assert jnp.allclose(loss3, ref3, atol=1e-4, rtol=1e-4), (loss3, ref3)

    # Case 4: class-tiled path with padded class columns AND ragged batch.
    nc4, b4 = 200, 12
    logits4 = jax.random.normal(ks[6], (b4, nc4), dtype=jnp.float32)
    targets4 = jax.random.randint(ks[7], (b4,), 0, nc4, dtype=jnp.int32)
    loss4 = cross_entropy_label_smooth(logits4, targets4, num_classes=nc4,
                                       epsilon=epsilon, max_block_cols=128)
    jax.block_until_ready(loss4)
    ref4 = _reference(logits4, targets4, epsilon, nc4)
    assert jnp.allclose(loss4, ref4, atol=1e-4, rtol=1e-4), (loss4, ref4)

    print("KERNEL_OK")
</pallas_src>

<mosaic_0001>
module attributes {stable_mosaic.version = 11 : i64} {
  func.func @_ce_label_smooth_kernel(%arg0: i32, %arg1: i32, %arg2: memref<8x16xf32, #tpu.memory_space<vmem>>, %arg3: memref<8x1xi32, #tpu.memory_space<vmem>>, %arg4: memref<1x1xf32, #tpu.memory_space<smem>>, %arg5: memref<8x1xf32, #tpu.memory_space<vmem>>, %arg6: memref<8x1xf32, #tpu.memory_space<vmem>>, %arg7: memref<8x1xf32, #tpu.memory_space<vmem>>, %arg8: memref<8x1xf32, #tpu.memory_space<vmem>>) attributes {dimension_semantics = [#tpu.dimension_semantics<arbitrary>, #tpu.dimension_semantics<arbitrary>], iteration_bounds = array<i64: 1, 1>, scalar_prefetch = 0 : i64, scratch_operands = 4 : i64, tpu.core_type = #tpu.core_type<tc>, window_params = [{transform_indices = @transform_0, window_bounds = array<i64: 8, 16>}, {transform_indices = @transform_1, window_bounds = array<i64: 8, 1>}, {transform_indices = @transform_2, window_bounds = array<i64: 1, 1>}]} {
    %c0_i32 = arith.constant 0 : i32
    %0 = arith.cmpi eq, %arg1, %c0_i32 : i32
    %1 = arith.extui %0 : i1 to i32
    %c0_i32_0 = arith.constant 0 : i32
    %2 = arith.cmpi ne, %1, %c0_i32_0 : i32
    scf.if %2 {
      %cst_26 = arith.constant -1.000000e+30 : f32
      %42 = vector.broadcast %cst_26 : f32 to vector<8x1xf32>
      %c0_27 = arith.constant 0 : index
      %c0_28 = arith.constant 0 : index
      %43 = vector.load %arg5[%c0_27, %c0_28] : memref<8x1xf32, #tpu.memory_space<vmem>>, vector<8x1xf32>
      tpu.vector_store %arg5[%c0_27, %c0_28], %42 {strides = array<i32>} : memref<8x1xf32, #tpu.memory_space<vmem>>, vector<8x1xf32>,
      %cst_29 = arith.constant 0.000000e+00 : f32
      %44 = vector.broadcast %cst_29 : f32 to vector<8x1xf32>
      %c0_30 = arith.constant 0 : index
      %c0_31 = arith.constant 0 : index
      %45 = vector.load %arg6[%c0_30, %c0_31] : memref<8x1xf32, #tpu.memory_space<vmem>>, vector<8x1xf32>
      tpu.vector_store %arg6[%c0_30, %c0_31], %44 {strides = array<i32>} : memref<8x1xf32, #tpu.memory_space<vmem>>, vector<8x1xf32>,
      %cst_32 = arith.constant 0.000000e+00 : f32
      %46 = vector.broadcast %cst_32 : f32 to vector<8x1xf32>
      %c0_33 = arith.constant 0 : index
      %c0_34 = arith.constant 0 : index
      %47 = vector.load %arg7[%c0_33, %c0_34] : memref<8x1xf32, #tpu.memory_space<vmem>>, vector<8x1xf32>
      tpu.vector_store %arg7[%c0_33, %c0_34], %46 {strides = array<i32>} : memref<8x1xf32, #tpu.memory_space<vmem>>, vector<8x1xf32>,
      %cst_35 = arith.constant 0.000000e+00 : f32
      %48 = vector.broadcast %cst_35 : f32 to vector<8x1xf32>
      %c0_36 = arith.constant 0 : index
      %c0_37 = arith.constant 0 : index
      %49 = vector.load %arg8[%c0_36, %c0_37] : memref<8x1xf32, #tpu.memory_space<vmem>>, vector<8x1xf32>
      tpu.vector_store %arg8[%c0_36, %c0_37], %48 {strides = array<i32>} : memref<8x1xf32, #tpu.memory_space<vmem>>, vector<8x1xf32>,
    } else {
    }
    %c0 = arith.constant 0 : index
    %c0_1 = arith.constant 0 : index
    %3 = vector.load %arg2[%c0, %c0_1] : memref<8x16xf32, #tpu.memory_space<vmem>>, vector<8x16xf32>
    %c16_i32 = arith.constant 16 : i32
    %4 = arith.muli %arg1, %c16_i32 : i32
    %5 = tpu.iota {dimensions = array<i32: 1>} : vector<8x16xi32>
    %6 = vector.broadcast %4 : i32 to vector<8x16xi32>
    %7 = arith.addi %6, %5 : vector<8x16xi32>
    %cst = arith.constant dense<0xFF800000> : vector<8xf32>
    %8 = vector.multi_reduction <maximumf>, %3, %cst [1] : vector<8x16xf32> to vector<8xf32>
    %9 = vector.shape_cast %8 : vector<8xf32> to vector<8x1xf32>
    %c0_2 = arith.constant 0 : index
    %c0_3 = arith.constant 0 : index
    %10 = vector.load %arg5[%c0_2, %c0_3] : memref<8x1xf32, #tpu.memory_space<vmem>>, vector<8x1xf32>
    %11 = arith.maximumf %10, %9 : vector<8x1xf32>
    %12 = vector.broadcast %11 : vector<8x1xf32> to vector<8x16xf32>
    %13 = arith.subf %3, %12 : vector<8x16xf32>
    %14 = math.exp %13 : vector<8x16xf32>
    %c0_4 = arith.constant 0 : index
    %c0_5 = arith.constant 0 : index
    %15 = vector.load %arg6[%c0_4, %c0_5] : memref<8x1xf32, #tpu.memory_space<vmem>>, vector<8x1xf32>
    %16 = arith.subf %10, %11 : vector<8x1xf32>
    %17 = math.exp %16 : vector<8x1xf32>
    %18 = arith.mulf %15, %17 : vector<8x1xf32>
    %cst_6 = arith.constant dense<0.000000e+00> : vector<8xf32>
    %19 = vector.multi_reduction <add>, %14, %cst_6 [1] : vector<8x16xf32> to vector<8xf32>
    %20 = vector.shape_cast %19 : vector<8xf32> to vector<8x1xf32>
    %21 = arith.addf %18, %20 : vector<8x1xf32>
    %c0_7 = arith.constant 0 : index
    %c0_8 = arith.constant 0 : index
    %22 = vector.load %arg6[%c0_7, %c0_8] : memref<8x1xf32, #tpu.memory_space<vmem>>, vector<8x1xf32>
    tpu.vector_store %arg6[%c0_7, %c0_8], %21 {strides = array<i32>} : memref<8x1xf32, #tpu.memory_space<vmem>>, vector<8x1xf32>,
    %c0_9 = arith.constant 0 : index
    %c0_10 = arith.constant 0 : index
    %23 = vector.load %arg5[%c0_9, %c0_10] : memref<8x1xf32, #tpu.memory_space<vmem>>, vector<8x1xf32>
    tpu.vector_store %arg5[%c0_9, %c0_10], %11 {strides = array<i32>} : memref<8x1xf32, #tpu.memory_space<vmem>>, vector<8x1xf32>,
    %c0_11 = arith.constant 0 : index
    %c0_12 = arith.constant 0 : index
    %24 = vector.load %arg7[%c0_11, %c0_12] : memref<8x1xf32, #tpu.memory_space<vmem>>, vector<8x1xf32>
    %cst_13 = arith.constant dense<0.000000e+00> : vector<8xf32>
    %25 = vector.multi_reduction <add>, %3, %cst_13 [1] : vector<8x16xf32> to vector<8xf32>
    %26 = vector.shape_cast %25 : vector<8xf32> to vector<8x1xf32>
    %27 = arith.addf %24, %26 : vector<8x1xf32>
    %c0_14 = arith.constant 0 : index
    %c0_15 = arith.constant 0 : index
    %28 = vector.load %arg7[%c0_14, %c0_15] : memref<8x1xf32, #tpu.memory_space<vmem>>, vector<8x1xf32>
    tpu.vector_store %arg7[%c0_14, %c0_15], %27 {strides = array<i32>} : memref<8x1xf32, #tpu.memory_space<vmem>>, vector<8x1xf32>,
    %c0_16 = arith.constant 0 : index
    %c0_17 = arith.constant 0 : index
    %29 = vector.load %arg3[%c0_16, %c0_17] : memref<8x1xi32, #tpu.memory_space<vmem>>, vector<8x1xi32>
    %c0_18 = arith.constant 0 : index
    %c0_19 = arith.constant 0 : index
    %30 = vector.load %arg8[%c0_18, %c0_19] : memref<8x1xf32, #tpu.memory_space<vmem>>, vector<8x1xf32>
    %31 = vector.broadcast %29 : vector<8x1xi32> to vector<8x16xi32>
    %32 = arith.cmpi eq, %7, %31 : vector<8x16xi32>
    %cst_20 = arith.constant 0.000000e+00 : f32
    %33 = vector.broadcast %cst_20 : f32 to vector<8x16xf32>
    %34 = arith.select %32, %3, %33 : vector<8x16xi1>, vector<8x16xf32>
    %cst_21 = arith.constant dense<0.000000e+00> : vector<8xf32>
    %35 = vector.multi_reduction <add>, %34, %cst_21 [1] : vector<8x16xf32> to vector<8xf32>
    %36 = vector.shape_cast %35 : vector<8xf32> to vector<8x1xf32>
    %37 = arith.addf %30, %36 : vector<8x1xf32>
    %c0_22 = arith.constant 0 : index
    %c0_23 = arith.constant 0 : index
    %38 = vector.load %arg8[%c0_22, %c0_23] : memref<8x1xf32, #tpu.memory_space<vmem>>, vector<8x1xf32>
    tpu.vector_store %arg8[%c0_22, %c0_23], %37 {strides = array<i32>} : memref<8x1xf32, #tpu.memory_space<vmem>>, vector<8x1xf32>,
    %c0_i32_24 = arith.constant 0 : i32
    %39 = arith.cmpi eq, %arg1, %c0_i32_24 : i32
    %40 = arith.extui %39 : i1 to i32
    %c0_i32_25 = arith.constant 0 : i32
    %41 = arith.cmpi ne, %40, %c0_i32_25 : i32
    scf.if %41 {
      %c0_26 = arith.constant 0 : index
      %c0_27 = arith.constant 0 : index
      %42 = vector.load %arg5[%c0_26, %c0_27] : memref<8x1xf32, #tpu.memory_space<vmem>>, vector<8x1xf32>
      %c0_28 = arith.constant 0 : index
      %c0_29 = arith.constant 0 : index
      %43 = vector.load %arg6[%c0_28, %c0_29] : memref<8x1xf32, #tpu.memory_space<vmem>>, vector<8x1xf32>
      %44 = math.log %43 : vector<8x1xf32>
      %45 = arith.addf %42, %44 : vector<8x1xf32>
      %c0_30 = arith.constant 0 : index
      %c0_31 = arith.constant 0 : index
      %46 = vector.load %arg8[%c0_30, %c0_31] : memref<8x1xf32, #tpu.memory_space<vmem>>, vector<8x1xf32>
      %47 = arith.subf %45, %46 : vector<8x1xf32>
      %cst_32 = arith.constant 0.899999976 : f32
      %48 = vector.broadcast %cst_32 : f32 to vector<8x1xf32>
      %49 = arith.mulf %48, %47 : vector<8x1xf32>
      %cst_33 = arith.constant 1.600000e+01 : f32
      %50 = vector.broadcast %cst_33 : f32 to vector<8x1xf32>
      %51 = arith.mulf %50, %45 : vector<8x1xf32>
      %c0_34 = arith.constant 0 : index
      %c0_35 = arith.constant 0 : index
      %52 = vector.load %arg7[%c0_34, %c0_35] : memref<8x1xf32, #tpu.memory_space<vmem>>, vector<8x1xf32>
      %53 = arith.subf %51, %52 : vector<8x1xf32>
      %cst_36 = arith.constant 6.250000e-03 : f32
      %54 = vector.broadcast %cst_36 : f32 to vector<8x1xf32>
      %55 = arith.mulf %54, %53 : vector<8x1xf32>
      %56 = arith.addf %49, %55 : vector<8x1xf32>
      %57 = vector.shape_cast %56 : vector<8x1xf32> to vector<1x8x1xf32>
      %cst_37 = arith.constant dense<0.000000e+00> : vector<1xf32>
      %58 = vector.multi_reduction <add>, %57, %cst_37 [1, 2] : vector<1x8x1xf32> to vector<1xf32>
      %59 = vector.shape_cast %58 : vector<1xf32> to vector<1x1x1xf32>
      %60 = vector.extract %59[0, 0, 0] : f32 from vector<1x1x1xf32>
      %61 = arith.index_cast %arg0 : i32 to index
      %c0_38 = arith.constant 0 : index
      %62 = memref.load %arg4[%61, %c0_38] : memref<1x1xf32, #tpu.memory_space<smem>>
      memref.store %60, %arg4[%61, %c0_38] : memref<1x1xf32, #tpu.memory_space<smem>>
    } else {
    }
    return
  }
  func.func @transform_0(%arg0: i32, %arg1: i32) -> (i32, i32) {
    %c0_i32 = arith.constant 0 : i32
    return %arg0, %arg1 : i32, i32
  }
  func.func @transform_1(%arg0: i32, %arg1: i32) -> (i32, i32) {
    %c0_i32 = arith.constant 0 : i32
    %c0_i32_0 = arith.constant 0 : i32
    return %arg0, %c0_i32 : i32, i32
  }
  func.func @transform_2(%arg0: i32, %arg1: i32) -> (i32, i32) {
    %c0_i32 = arith.constant 0 : i32
    %c0_i32_0 = arith.constant 0 : i32
    %c0_i32_1 = arith.constant 0 : i32
    return %c0_i32, %c0_i32_0 : i32, i32
  }
}

</mosaic_0001>

<bundles_post_ra>
// kernel: tpu_custom_call.1
= control target key start
LH: loop header
LB: loop body
LE: loop exit
PB: predicated region body
PF: predicated region fallthrough
CT: control target
= control target key end

     0   :  { %vm27_vm0 = vcmask 130048   ;;  %s189_s0 = inlined_call_operand.vmem [shape: f32[8,16], index: 0, kind: input, shape index: {}]   ;;  %s190_s1 = inlined_call_operand.vmem [shape: s32[8,1], index: 1, kind: input, shape index: {}]   ;;  %s191_s2 = inlined_call_operand.hbm [shape: f32[1,1], index: 2, kind: output, shape index: {}]  }
   0x1   :  { %v21_v0 = vld [vmem:[%s189_s0] sm:$0xff] }
   0x2   :  { %7 = vsyncpa [#allocation7], 0  ;;  %v28_v1 = vsel %vm27_vm0, %v21_v0, -inf  ;;  %vm16_vm1 = vcmask 7168   ;;  %v139_v2 = vmov -1e+30   ;;  %v23_v13 = vlaneseq }
   0x3   :  { %29 = vmax.xlane.f32.xlu0 %v28_v1  ;;  %17 = vst.msk [vmem:[#allocation2] sm:$0xff] %vm16_vm1, %v139_v2  ;;  %v140_v3 = vmov 0   ;;  %v59_v4 = vld [vmem:[%s190_s1] sm:$0xff]  ;;  %v141_v5 = vmov 0.0   ;;  %v54_v18 = vsel %vm27_vm0, %v21_v0, 0.0  ;;  %s127_s14 = scalar_lea.hbm %s191_s2, 16 }
   0x4   :  { %119 = vset.pattern.permute.xlu0 %v140_v3  ;;  %120 = vset.pattern.permute.xlu1 %v140_v3  ;;  %18 = vst.msk [vmem:[#allocation3] sm:$0xff] %vm16_vm1, %v141_v5  ;;  %19 = vst.msk [vmem:[#allocation4] sm:$0xff] %vm16_vm1, %v141_v5  ;;  %v24_v14 = vand.u32 127, %v23_v13  ;;  %p128_p0 = scmp.ne.s32.totalorder %s191_s2, %s127_s14  ;;  %p131_p1 = scmp.lt.u32.totalorder %s127_s14, %s191_s2 }
   0x5   :  { %62 = vperm.xlu1 %120, %v59_v4   ;;  %20 = vst.msk [vmem:[#allocation5] sm:$0xff] %vm16_vm1, %v141_v5 }
   0x6   :  { %p133_p2 = pnand %p131_p1, %p128_p0 }
   0xa   :  { %v31_v6 = vld [vmem:[#allocation2] sm:$0xff] }
   0xb   :  { %v41_v23 = vld [vmem:[#allocation3] sm:$0xff]  ;;  %v53_v27 = vld [vmem:[#allocation4] sm:$0xff] }
   0xc   :  { %v60_v30 = vld [vmem:[#allocation5] sm:$0xff] }
  0x84   :  { %v63_v15 = vpop.permute.xlu1 %62 }
  0x85   :  { %vm64_vm2 = vcmp.eq.s32.totalorder %v24_v14, %v63_v15 }
  0x86   :  { %v65_v19 = vsel %vm64_vm2, %v21_v0, 0.0 }
  0x87   :  { %v66_v20 = vsel %vm27_vm0, %v65_v19, 0.0 }
  0x90   :  { %v30_v7 = vpop.xlane.xlu0 %29 }
  0x91   :  { %v32_v8 = vmax.f32 %v31_v6, %v30_v7 }
  0x93   :  { %v42_v9 = vsub.f32 %v31_v6, %v32_v8  ;;  %52 = vst.msk [vmem:[#allocation2] sm:$0xff] %vm16_vm1, %v32_v8  ;;  %35 = vperm.xlu0 %119, %v32_v8  }
  0x95   :  { %v43_v21 = vmul.f32 1.442695, %v42_v9 }
  0x9a   :  { %v74_v36 = vld [vmem:[#allocation2] sm:$0xff] }
 0x112   :  { %v36_v10 = vpop.permute.xlu0 %35 }
 0x113   :  { %v38_v11 = vsub.f32 %v21_v0, %v36_v10 }
 0x115   :  { %v39_v12 = vmul.f32 1.442695, %v38_v11 }
 0x117   :  { %121 = vpow2.f32 %v39_v12 }
 0x118   :  { %123 = vpow2.f32 %v43_v21 }
 0x121   :  { %v122_v16 = vpop.eup %121 }
 0x122   :  { %v46_v17 = vsel %vm27_vm0, %v122_v16, 0.0  ;;  %v124_v22 = vpop.eup %123 }
 0x123   :  { %47 = vadd.xlane.f32.xlu1 %v46_v17  ;;  %v45_v24 = vmul.f32 %v124_v22, %v41_v23 }
 0x127   :  { %55 = vadd.xlane.f32.xlu1 %v54_v18 }
 0x12b   :  { %67 = vadd.xlane.f32.xlu1 %v66_v20 }
 0x1b0   :  { %v48_v25 = vpop.xlane.xlu1 %47 }
 0x1b1   :  { %v49_v26 = vadd.f32 %v48_v25, %v45_v24 }
 0x1b3   :  { %51 = vst.msk [vmem:[#allocation3] sm:$0xff] %vm16_vm1, %v49_v26 }
 0x1b4   :  { %v56_v28 = vpop.xlane.xlu1 %55 }
 0x1b5   :  { %v57_v29 = vadd.f32 %v56_v28, %v53_v27 }
 0x1b7   :  { %58 = vst.msk [vmem:[#allocation4] sm:$0xff] %vm16_vm1, %v57_v29 }
 0x1b8   :  { %v68_v31 = vpop.xlane.xlu1 %67 }
 0x1b9   :  { %v69_v32 = vadd.f32 %v68_v31, %v60_v30 }
 0x1ba   :  { %v75_v33 = vld [vmem:[#allocation3] sm:$0xff] }
 0x1bb   :  { %70 = vst.msk [vmem:[#allocation5] sm:$0xff] %vm16_vm1, %v69_v32  ;;  %125 = vlog2.f32 %v75_v33 }
 0x1be   :  { %v83_v41 = vld [vmem:[#allocation4] sm:$0xff] }
 0x1c2   :  { %v79_v37 = vld [vmem:[#allocation5] sm:$0xff] }
 0x1c5   :  { %v126_v34 = vpop.eup %125 }
 0x1c6   :  { %v77_v35 = vmul.f32 0.6931472, %v126_v34 }
 0x1c8   :  { %v78_v38 = vadd.f32 %v77_v35, %v74_v36 }
 0x1ca   :  { %v80_v39 = vsub.f32 %v78_v38, %v79_v37  ;;  %v82_v40 = vmul.f32 16.0, %v78_v38 }
 0x1cc   :  { %v84_v42 = vsub.f32 %v82_v40, %v83_v41  ;;  %v81_v43 = vmul.f32 0.9, %v80_v39 }
 0x1ce   :  { %v85_v44 = vmul.f32 0.00625, %v84_v42 }
 0x1d0   :  { %v86_v45 = vadd.f32 %v85_v44, %v81_v43 }
 0x1d2   :  { %v87_v46 = vsel %vm16_vm1, %v86_v45, 0.0 }
 0x1d3   :  { %88 = vadd.xlane.f32.xlu0 %v87_v46 }
 0x260   :  { %v89_v47 = vpop.xlane.xlu0 %88 }
 0x261   :  { %v90_v48 = vrot.slane %v89_v47, 4 }
 0x263   :  { %v91_v49 = vadd.f32 %v90_v48, %v89_v47 }
 0x265   :  { %v92_v50 = vrot.slane %v91_v49, 2 }
 0x267   :  { %v93_v51 = vadd.f32 %v92_v50, %v91_v49 }
 0x269   :  { %v94_v52 = vrot.slane %v93_v51, 1 }
 0x26b   :  { %v95_v53 = vadd.f32 %v94_v52, %v93_v51 }
 0x26d   :  { %113 = vpush %v95_v53 }
 0x29e   :  { %s114_s0 = spop %113 }
 0x29f   :  { %99 = sst [smem:[#allocation6]] %s114_s0 }
 0x2a0   :  { %136 = shalt.err (!%p133_p2)
}
 0x2a1   :  { %s142_s19 = smov [#allocation6]  }
 0x2a2   :  { %107 = dma.smem_to_hbm %s142_s19, 16, %s191_s2, [#allocation7]  }
 0x2a3   :  { %137 = dma.done.wait [#allocation7], 16  }
 0x2a4   :  { %138 = vsyncadd [#allocation7], 4294967280 }
 0x2a5   :  { %111 = sfence }
 0x2a6   :  { %112 = vsyncpa [#allocation7], 1 }

</bundles_post_ra>
